<compile_context>
chip_gen: v7x
topology: tpu7x:2x2x1
jax: 0.10.0
libtpu: 0.0.40
codegen_flags: <defaults>
</compile_context>

<pallas_src>
import jax
import jax.numpy as jnp
from jax.experimental import pallas as pl
from jax.experimental.pallas import tpu as pltpu


# ----------------------------- helpers ---------------------------------------

def _sigmoid(x):
    # sigmoid(x) == 0.5*(tanh(x/2)+1): one EUP op per element (tanh) plus a
    # cheap VPU mul/add, instead of exp + reciprocal (2 EUP pushes).
    return 0.5 * (jnp.tanh(0.5 * x) + 1.0)


def _gate_math(gates_f32, c_prev_f32, H):
    """gates_f32: [bm, 4H] f32 (PyTorch order i,f,g,o); returns (h, c) f32."""
    i_g = _sigmoid(gates_f32[:, 0 * H:1 * H])
    f_g = _sigmoid(gates_f32[:, 1 * H:2 * H])
    g_g = jnp.tanh(gates_f32[:, 2 * H:3 * H])
    o_g = _sigmoid(gates_f32[:, 3 * H:4 * H])
    c_new = f_g * c_prev_f32 + i_g * g_g
    h_new = o_g * jnp.tanh(c_new)
    return h_new, c_new


def _vmem_limit(est_bytes):
    default_scoped = 32 << 20
    if est_bytes <= default_scoped:
        return None
    # Leave headroom under the physical ceiling (64 MiB/TC on v7x, 128 MiB on
    # v5e/v6e); per the v6e guidance we prefer raising the limit over tiling
    # the 4H axis until it genuinely doesn't fit.
    return min(int(est_bytes * 1.25), 100 << 20)


# ----------------------------- Pallas kernels --------------------------------

def _lstm_step_kernel(x_ref, h_ref, c_ref, wih_ref, whh_ref, b_ref,
                      h_out_ref, c_out_ref):
    """One LSTM step for a [bm, *] batch tile. Two accumulating MXU dots."""
    H = c_ref.shape[-1]
    w_dtype = wih_ref.dtype
    gates = (jnp.dot(x_ref[...].astype(w_dtype), wih_ref[...],
                     preferred_element_type=jnp.float32)
             + jnp.dot(h_ref[...].astype(w_dtype), whh_ref[...],
                       preferred_element_type=jnp.float32)
             + b_ref[...].astype(jnp.float32))          # [1,4H] -> [bm,4H]

    h_new, c_new = _gate_math(gates, c_ref[...].astype(jnp.float32), H)
    h_out_ref[...] = h_new.astype(h_out_ref.dtype)
    c_out_ref[...] = c_new.astype(c_out_ref.dtype)


def _lstm_seq_kernel(x_ref, h0_ref, c0_ref, wih_ref, whh_ref, b_ref,
                     hseq_ref, cfin_ref, h_scr, c_scr):
    """Weight-resident sequence kernel: grid axis = time, h/c carried in VMEM."""
    t = pl.program_id(0)
    H = c0_ref.shape[-1]

    @pl.when(t == 0)
    def _():
        h_scr[...] = h0_ref[...].astype(jnp.float32)
        c_scr[...] = c0_ref[...].astype(jnp.float32)

    w_dtype = wih_ref.dtype
    gates = (jnp.dot(x_ref[0].astype(w_dtype), wih_ref[...],
                     preferred_element_type=jnp.float32)
             + jnp.dot(h_scr[...].astype(w_dtype), whh_ref[...],
                       preferred_element_type=jnp.float32)
             + b_ref[...].astype(jnp.float32))

    h_new, c_new = _gate_math(gates, c_scr[...], H)
    h_scr[...] = h_new
    c_scr[...] = c_new

    hseq_ref[0] = h_new.astype(hseq_ref.dtype)

    @pl.when(t == pl.num_programs(0) - 1)
    def _():
        cfin_ref[...] = c_new.astype(cfin_ref.dtype)


# ------------------------------ host wrappers ---------------------------------

def prepare_lstm_weights(w_ih, w_hh, b_ih, b_hh, weight_dtype=None):
    """Hoisted, once-per-model weight reformat (do NOT call per timestep).

    Returns:
      w_ih_t : [I, 4H]  (optionally cast, e.g. bfloat16)
      w_hh_t : [H, 4H]
      bias   : [1, 4H]  = b_ih + b_hh  (f32)
    """
    w_ih_t = jnp.transpose(w_ih)
    w_hh_t = jnp.transpose(w_hh)
    if weight_dtype is not None:
        w_ih_t = w_ih_t.astype(weight_dtype)
        w_hh_t = w_hh_t.astype(weight_dtype)
    bias = (b_ih + b_hh).astype(jnp.float32).reshape(1, -1)
    return w_ih_t, w_hh_t, bias


def _pick_batch_tile(B):
    # Single-step kernels are weight-bandwidth-bound: keep the whole batch in
    # one grid step (one TC) unless B is large enough that the activation
    # slabs dominate VMEM.  Splitting the batch across v7x's two TensorCores
    # would duplicate the weight HBM fetch, a net loss in this regime.
    for bm in (256,):
        if B % bm == 0 and B // bm >= 2:
            return bm
    return B


def _lstm_cell_impl(x, hx, cx, w_ih_t, w_hh_t, bias):
    """Single LSTM step.  x:[B,I]  hx/cx:[B,H]  w_ih_t:[I,4H]  w_hh_t:[H,4H]."""
    B, I = x.shape
    H = hx.shape[1]
    assert w_ih_t.shape == (I, 4 * H) and w_hh_t.shape == (H, 4 * H)
    assert bias.shape == (1, 4 * H)
    # NOTE: gate slices are only free when H % 128 == 0 (lane-aligned); other
    # H still works but pays XLU shuffles in the elementwise phase.
    out_dtype = hx.dtype

    bm = _pick_batch_tile(B)
    grid = (B // bm,)

    w_item = jnp.dtype(w_ih_t.dtype).itemsize
    a_item = jnp.dtype(x.dtype).itemsize
    o_item = jnp.dtype(out_dtype).itemsize
    # Count the actual buffer multiplicity: every block (including the
    # constant-index resident weights) is 2x-allocated by the default pipeline.
    est_bytes = (2 * (I + H) * 4 * H * w_item        # resident W_ih^T / W_hh^T
                 + 2 * 4 * H * 4                     # bias
                 + 2 * bm * (I + H) * a_item         # x / hx input blocks
                 + 2 * bm * H * a_item               # cx input blocks
                 + 2 * 2 * bm * H * o_item           # h / c output blocks
                 + bm * 4 * H * 4)                   # f32 gates temporary

    cost = pl.CostEstimate(
        flops=2 * B * (I + H) * 4 * H,
        transcendentals=5 * B * H,
        bytes_accessed=int((I + H) * 4 * H * w_item + B * (I + 4 * H) * a_item))

    # In-place state update: hx -> h_out, cx -> c_out (realized when the
    # caller donates hx/cx, see lstm_cell_fused_inplace).
    aliases = {}
    if hx.dtype == out_dtype:
        aliases[1] = 0
    if cx.dtype == out_dtype:
        aliases[2] = 1

    h_new, c_new = pl.pallas_call(
        _lstm_step_kernel,
        out_shape=(jax.ShapeDtypeStruct((B, H), out_dtype),
                   jax.ShapeDtypeStruct((B, H), out_dtype)),
        grid=grid,
        in_specs=[
            pl.BlockSpec((bm, I), lambda b: (b, 0)),          # x tile
            pl.BlockSpec((bm, H), lambda b: (b, 0)),          # hx tile
            pl.BlockSpec((bm, H), lambda b: (b, 0)),          # cx tile
            pl.BlockSpec((I, 4 * H), lambda b: (0, 0)),       # resident W_ih^T
            pl.BlockSpec((H, 4 * H), lambda b: (0, 0)),       # resident W_hh^T
            pl.BlockSpec((1, 4 * H), lambda b: (0, 0)),       # resident bias
        ],
        out_specs=(pl.BlockSpec((bm, H), lambda b: (b, 0)),
                   pl.BlockSpec((bm, H), lambda b: (b, 0))),
        input_output_aliases=aliases,
        cost_estimate=cost,
        compiler_params=pltpu.CompilerParams(
            # "arbitrary": the batch grid (if any) stays on one TC so the
            # resident weights are not re-fetched per TensorCore.
            dimension_semantics=("arbitrary",),
            vmem_limit_bytes=_vmem_limit(est_bytes)),
    )(x, hx, cx, w_ih_t, w_hh_t, bias)
    return h_new, c_new


lstm_cell_fused = jax.jit(_lstm_cell_impl)
# Donating hx/cx makes the hx->h_out / cx->c_out aliasing real (no defensive
# copy); callers must not reuse the donated state buffers afterwards.
lstm_cell_fused_inplace = jax.jit(_lstm_cell_impl, donate_argnums=(1, 2))


def _lstm_seq_impl(x_seq, h0, c0, w_ih_t, w_hh_t, bias):
    """Weight-resident recurrence: x_seq [T,B,I] -> (h_seq [T,B,H], c_T [B,H])."""
    T, B, I = x_seq.shape
    H = h0.shape[1]
    assert w_ih_t.shape == (I, 4 * H) and w_hh_t.shape == (H, 4 * H)
    out_dtype = h0.dtype

    w_item = jnp.dtype(w_ih_t.dtype).itemsize
    a_item = jnp.dtype(x_seq.dtype).itemsize
    o_item = jnp.dtype(out_dtype).itemsize
    est_bytes = (2 * (I + H) * 4 * H * w_item        # resident weights (2x alloc)
                 + 2 * 4 * H * 4                     # bias
                 + 2 * B * I * a_item                # x_t input blocks
                 + 2 * 2 * B * H * a_item            # h0 / c0
                 + 2 * B * H * o_item                # h_seq output blocks
                 + 2 * B * H * o_item                # c_fin output
                 + 2 * B * H * 4                     # h/c f32 scratch
                 + B * 4 * H * 4)                    # f32 gates temporary

    cost = pl.CostEstimate(
        flops=2 * T * B * (I + H) * 4 * H,
        transcendentals=5 * T * B * H,
        bytes_accessed=int((I + H) * 4 * H * w_item
                           + T * B * (I + H) * a_item + 2 * B * H * a_item))

    h_seq, c_fin = pl.pallas_call(
        _lstm_seq_kernel,
        out_shape=(jax.ShapeDtypeStruct((T, B, H), out_dtype),
                   jax.ShapeDtypeStruct((B, H), out_dtype)),
        grid=(T,),
        in_specs=[
            pl.BlockSpec((1, B, I), lambda t: (t, 0, 0)),     # x_t
            pl.BlockSpec((B, H), lambda t: (0, 0)),           # h0 (constant)
            pl.BlockSpec((B, H), lambda t: (0, 0)),           # c0 (constant)
            pl.BlockSpec((I, 4 * H), lambda t: (0, 0)),       # W_ih^T, DMA'd once
            pl.BlockSpec((H, 4 * H), lambda t: (0, 0)),       # W_hh^T, DMA'd once
            pl.BlockSpec((1, 4 * H), lambda t: (0, 0)),       # bias
        ],
        out_specs=(pl.BlockSpec((1, B, H), lambda t: (t, 0, 0)),
                   pl.BlockSpec((B, H), lambda t: (0, 0))),
        scratch_shapes=[pltpu.VMEM((B, H), jnp.float32),      # h carry
                        pltpu.VMEM((B, H), jnp.float32)],     # c carry
        cost_estimate=cost,
        compiler_params=pltpu.CompilerParams(
            dimension_semantics=("arbitrary",),               # recurrence carry
            vmem_limit_bytes=_vmem_limit(est_bytes)),
    )(x_seq, h0, c0, w_ih_t, w_hh_t, bias)
    return h_seq, c_fin


lstm_sequence_fused = jax.jit(_lstm_seq_impl)


def lstm_cell(x, hx, cx, w_ih, w_hh, b_ih, b_hh):
    """Convenience wrapper matching nn.LSTMCell(x, (hx, cx)) semantics.

    For recurrent use call `prepare_lstm_weights` ONCE and then either
    `lstm_sequence_fused` (preferred: weight fetched once for the whole
    sequence) or `lstm_cell_fused` per step.
    """
    w_ih_t, w_hh_t, bias = prepare_lstm_weights(w_ih, w_hh, b_ih, b_hh)
    return lstm_cell_fused(x, hx, cx, w_ih_t, w_hh_t, bias)


# ---------------- deterministic parameter init (matches reset_params) --------

def _orthogonal(key, shape, dtype=jnp.float32):
    # PyTorch nn.init.orthogonal_: QR of a random normal, sign-corrected.
    rows, cols = shape
    flat = jax.random.normal(key, (rows, cols), dtype=jnp.float32)
    transpose = rows < cols
    if transpose:
        flat = flat.T
    q, r = jnp.linalg.qr(flat)
    d = jnp.sign(jnp.diag(r))
    q = q * d[None, :]
    if transpose:
        q = q.T
    return q.astype(dtype)


def _kaiming_normal(key, shape, dtype=jnp.float32):
    # PyTorch nn.init.kaiming_normal_ default: fan_in mode, gain=sqrt(2).
    fan_in = shape[1]
    std = (2.0 / fan_in) ** 0.5
    return (std * jax.random.normal(key, shape, jnp.float32)).astype(dtype)


def init_lstm_params(key, input_size, hidden_size, dtype=jnp.float32):
    k_hh, k_ih = jax.random.split(key)
    w_hh = _orthogonal(k_hh, (4 * hidden_size, hidden_size), dtype)
    w_ih = _kaiming_normal(k_ih, (4 * hidden_size, input_size), dtype)
    b_ih = jnp.zeros((4 * hidden_size,), dtype)
    # bias_hh = 0 everywhere except the forget-gate chunk (chunk index 1) = 1.
    b_hh = jnp.zeros((4 * hidden_size,), dtype)
    b_hh = b_hh.at[hidden_size:2 * hidden_size].set(1.0)
    return w_ih, w_hh, b_ih, b_hh


# ---------------- reference (plain JAX) for sanity checks --------------------

def lstm_cell_ref(x, hx, cx, w_ih, w_hh, b_ih, b_hh):
    H = hx.shape[1]
    gates = x @ w_ih.T + b_ih + hx @ w_hh.T + b_hh
    i, f, g, o = (gates[:, 0:H], gates[:, H:2 * H],
                  gates[:, 2 * H:3 * H], gates[:, 3 * H:4 * H])
    i, f, g, o = jax.nn.sigmoid(i), jax.nn.sigmoid(f), jnp.tanh(g), jax.nn.sigmoid(o)
    c = f * cx + i * g
    h = o * jnp.tanh(c)
    return h, c


# TODO(synk): the module also declares nn.Dropout(p=dropout) but never applies
# it in forward(), so no dropout is implemented here.

if __name__ == "__main__":
    B, INPUT, HIDDEN, T = 8, 64, 128, 6

    key = jax.random.PRNGKey(0)
    k_param, k_x, k_h, k_c, k_seq = jax.random.split(key, 5)

    w_ih, w_hh, b_ih, b_hh = init_lstm_params(k_param, INPUT, HIDDEN)
    x = jax.random.normal(k_x, (B, INPUT), jnp.float32)
    hx = jax.random.normal(k_h, (B, HIDDEN), jnp.float32)
    cx = jax.random.normal(k_c, (B, HIDDEN), jnp.float32)

    # Reformat weights once, reuse every step.
    w_ih_t, w_hh_t, bias = prepare_lstm_weights(w_ih, w_hh, b_ih, b_hh)

    # --- single step vs reference -------------------------------------------
    h_new, c_new = lstm_cell_fused(x, hx, cx, w_ih_t, w_hh_t, bias)
    jax.block_until_ready((h_new, c_new))
    h_ref, c_ref = lstm_cell_ref(x, hx, cx, w_ih, w_hh, b_ih, b_hh)
    assert jnp.allclose(h_new, h_ref, atol=1e-5, rtol=1e-5)
    assert jnp.allclose(c_new, c_ref, atol=1e-5, rtol=1e-5)

    # Convenience wrapper (matches the PyTorch forward signature).
    h2, c2 = lstm_cell(x, hx, cx, w_ih, w_hh, b_ih, b_hh)
    jax.block_until_ready((h2, c2))
    assert jnp.allclose(h2, h_new, atol=1e-6, rtol=1e-6)
    assert jnp.allclose(c2, c_new, atol=1e-6, rtol=1e-6)

    # --- bf16 weight storage path (halves weight HBM traffic, f32 accum) -----
    w_ih_bf, w_hh_bf, bias_bf = prepare_lstm_weights(
        w_ih, w_hh, b_ih, b_hh, weight_dtype=jnp.bfloat16)
    h_bf, c_bf = lstm_cell_fused(x, hx, cx, w_ih_bf, w_hh_bf, bias_bf)
    jax.block_until_ready((h_bf, c_bf))
    assert jnp.allclose(h_bf, h_ref, atol=5e-2, rtol=5e-2)
    assert jnp.allclose(c_bf, c_ref, atol=5e-2, rtol=5e-2)

    # --- weight-resident sequence kernel vs a scan of the reference ----------
    x_seq = jax.random.normal(k_seq, (T, B, INPUT), jnp.float32)
    h_seq, c_fin = lstm_sequence_fused(x_seq, hx, cx, w_ih_t, w_hh_t, bias)
    jax.block_until_ready((h_seq, c_fin))

    h_r, c_r = hx, cx
    h_stack = []
    for t in range(T):
        h_r, c_r = lstm_cell_ref(x_seq[t], h_r, c_r, w_ih, w_hh, b_ih, b_hh)
        h_stack.append(h_r)
    h_seq_ref = jnp.stack(h_stack, axis=0)
    assert jnp.allclose(h_seq, h_seq_ref, atol=1e-4, rtol=1e-4)
    assert jnp.allclose(c_fin, c_r, atol=1e-4, rtol=1e-4)

    # --- donated (true in-place) state update --------------------------------
    hx_d = hx + 0.0   # fresh buffers: they are consumed by donation below
    cx_d = cx + 0.0
    h_ip, c_ip = lstm_cell_fused_inplace(x, hx_d, cx_d, w_ih_t, w_hh_t, bias)
    jax.block_until_ready((h_ip, c_ip))
    assert jnp.allclose(h_ip, h_ref, atol=1e-5, rtol=1e-5)
    assert jnp.allclose(c_ip, c_ref, atol=1e-5, rtol=1e-5)

    print("KERNEL_OK")
</pallas_src>

<mosaic_0001>
module attributes {stable_mosaic.version = 11 : i64} {
  func.func @_lstm_step_kernel(%arg0: i32, %arg1: memref<8x64xf32, #tpu.memory_space<vmem>>, %arg2: memref<8x128xf32, #tpu.memory_space<vmem>>, %arg3: memref<8x128xf32, #tpu.memory_space<vmem>>, %arg4: memref<64x512xf32, #tpu.memory_space<vmem>>, %arg5: memref<128x512xf32, #tpu.memory_space<vmem>>, %arg6: memref<1x512xf32, #tpu.memory_space<vmem>>, %arg7: memref<8x128xf32, #tpu.memory_space<vmem>>, %arg8: memref<8x128xf32, #tpu.memory_space<vmem>>) attributes {dimension_semantics = [#tpu.dimension_semantics<arbitrary>], iteration_bounds = array<i64: 1>, scalar_prefetch = 0 : i64, scratch_operands = 0 : i64, tpu.core_type = #tpu.core_type<tc>, window_params = [{transform_indices = @transform_0, window_bounds = array<i64: 8, 64>}, {transform_indices = @transform_1, window_bounds = array<i64: 8, 128>}, {transform_indices = @transform_2, window_bounds = array<i64: 8, 128>}, {pipeline_mode = #tpu.pipeline_mode<synchronous>, transform_indices = @transform_3, window_bounds = array<i64: 64, 512>}, {pipeline_mode = #tpu.pipeline_mode<synchronous>, transform_indices = @transform_4, window_bounds = array<i64: 128, 512>}, {pipeline_mode = #tpu.pipeline_mode<synchronous>, transform_indices = @transform_5, window_bounds = array<i64: 1, 512>}, {transform_indices = @transform_6, window_bounds = array<i64: 8, 128>}, {transform_indices = @transform_7, window_bounds = array<i64: 8, 128>}]} {
    %c0 = arith.constant 0 : index
    %c0_0 = arith.constant 0 : index
    %0 = vector.load %arg1[%c0, %c0_0] : memref<8x64xf32, #tpu.memory_space<vmem>>, vector<8x64xf32>
    %c0_1 = arith.constant 0 : index
    %c0_2 = arith.constant 0 : index
    %1 = vector.load %arg4[%c0_1, %c0_2] : memref<64x512xf32, #tpu.memory_space<vmem>>, vector<64x512xf32>
    %cst = arith.constant dense<0.000000e+00> : vector<8x512xf32>
    %2 = tpu.matmul %0, %1, %cst {dimension_numbers = #tpu.dot_dimension_numbers<[1], [0], [0], [1], [0, 0, 1, 1], [], []>} : vector<8x64xf32>, vector<64x512xf32>, vector<8x512xf32> -> vector<8x512xf32>
    %c0_3 = arith.constant 0 : index
    %c0_4 = arith.constant 0 : index
    %3 = vector.load %arg2[%c0_3, %c0_4] : memref<8x128xf32, #tpu.memory_space<vmem>>, vector<8x128xf32>
    %c0_5 = arith.constant 0 : index
    %c0_6 = arith.constant 0 : index
    %4 = vector.load %arg5[%c0_5, %c0_6] : memref<128x512xf32, #tpu.memory_space<vmem>>, vector<128x512xf32>
    %cst_7 = arith.constant dense<0.000000e+00> : vector<8x512xf32>
    %5 = tpu.matmul %3, %4, %cst_7 {dimension_numbers = #tpu.dot_dimension_numbers<[1], [0], [0], [1], [0, 0, 1, 1], [], []>} : vector<8x128xf32>, vector<128x512xf32>, vector<8x512xf32> -> vector<8x512xf32>
    %6 = arith.addf %2, %5 : vector<8x512xf32>
    %c0_8 = arith.constant 0 : index
    %c0_9 = arith.constant 0 : index
    %7 = vector.load %arg6[%c0_8, %c0_9] : memref<1x512xf32, #tpu.memory_space<vmem>>, vector<1x512xf32>
    %8 = vector.broadcast %7 : vector<1x512xf32> to vector<8x512xf32>
    %9 = arith.addf %6, %8 : vector<8x512xf32>
    %c0_10 = arith.constant 0 : index
    %c0_11 = arith.constant 0 : index
    %10 = vector.load %arg3[%c0_10, %c0_11] : memref<8x128xf32, #tpu.memory_space<vmem>>, vector<8x128xf32>
    %11 = vector.extract_strided_slice %9 {offsets = [0, 0], sizes = [8, 128], strides = [1, 1]} : vector<8x512xf32> to vector<8x128xf32>
    %cst_12 = arith.constant 5.000000e-01 : f32
    %12 = vector.broadcast %cst_12 : f32 to vector<8x128xf32>
    %13 = arith.mulf %12, %11 : vector<8x128xf32>
    %14 = math.tanh %13 : vector<8x128xf32>
    %cst_13 = arith.constant 1.000000e+00 : f32
    %15 = vector.broadcast %cst_13 : f32 to vector<8x128xf32>
    %16 = arith.addf %14, %15 : vector<8x128xf32>
    %cst_14 = arith.constant 5.000000e-01 : f32
    %17 = vector.broadcast %cst_14 : f32 to vector<8x128xf32>
    %18 = arith.mulf %17, %16 : vector<8x128xf32>
    %19 = vector.extract_strided_slice %9 {offsets = [0, 128], sizes = [8, 128], strides = [1, 1]} : vector<8x512xf32> to vector<8x128xf32>
    %cst_15 = arith.constant 5.000000e-01 : f32
    %20 = vector.broadcast %cst_15 : f32 to vector<8x128xf32>
    %21 = arith.mulf %20, %19 : vector<8x128xf32>
    %22 = math.tanh %21 : vector<8x128xf32>
    %cst_16 = arith.constant 1.000000e+00 : f32
    %23 = vector.broadcast %cst_16 : f32 to vector<8x128xf32>
    %24 = arith.addf %22, %23 : vector<8x128xf32>
    %cst_17 = arith.constant 5.000000e-01 : f32
    %25 = vector.broadcast %cst_17 : f32 to vector<8x128xf32>
    %26 = arith.mulf %25, %24 : vector<8x128xf32>
    %27 = vector.extract_strided_slice %9 {offsets = [0, 256], sizes = [8, 128], strides = [1, 1]} : vector<8x512xf32> to vector<8x128xf32>
    %28 = math.tanh %27 : vector<8x128xf32>
    %29 = vector.extract_strided_slice %9 {offsets = [0, 384], sizes = [8, 128], strides = [1, 1]} : vector<8x512xf32> to vector<8x128xf32>
    %cst_18 = arith.constant 5.000000e-01 : f32
    %30 = vector.broadcast %cst_18 : f32 to vector<8x128xf32>
    %31 = arith.mulf %30, %29 : vector<8x128xf32>
    %32 = math.tanh %31 : vector<8x128xf32>
    %cst_19 = arith.constant 1.000000e+00 : f32
    %33 = vector.broadcast %cst_19 : f32 to vector<8x128xf32>
    %34 = arith.addf %32, %33 : vector<8x128xf32>
    %cst_20 = arith.constant 5.000000e-01 : f32
    %35 = vector.broadcast %cst_20 : f32 to vector<8x128xf32>
    %36 = arith.mulf %35, %34 : vector<8x128xf32>
    %37 = arith.mulf %26, %10 : vector<8x128xf32>
    %38 = arith.mulf %18, %28 : vector<8x128xf32>
    %39 = arith.addf %37, %38 : vector<8x128xf32>
    %40 = math.tanh %39 : vector<8x128xf32>
    %41 = arith.mulf %36, %40 : vector<8x128xf32>
    %c0_21 = arith.constant 0 : index
    %c0_22 = arith.constant 0 : index
    %42 = vector.load %arg7[%c0_21, %c0_22] : memref<8x128xf32, #tpu.memory_space<vmem>>, vector<8x128xf32>
    tpu.vector_store %arg7[%c0_21, %c0_22], %41 {strides = array<i32>} : memref<8x128xf32, #tpu.memory_space<vmem>>, vector<8x128xf32>,
    %c0_23 = arith.constant 0 : index
    %c0_24 = arith.constant 0 : index
    %43 = vector.load %arg8[%c0_23, %c0_24] : memref<8x128xf32, #tpu.memory_space<vmem>>, vector<8x128xf32>
    tpu.vector_store %arg8[%c0_23, %c0_24], %39 {strides = array<i32>} : memref<8x128xf32, #tpu.memory_space<vmem>>, vector<8x128xf32>,
    return
  }
  func.func @transform_0(%arg0: i32) -> (i32, i32) {
    %c0_i32 = arith.constant 0 : i32
    %c0_i32_0 = arith.constant 0 : i32
    return %arg0, %c0_i32 : i32, i32
  }
  func.func @transform_1(%arg0: i32) -> (i32, i32) {
    %c0_i32 = arith.constant 0 : i32
    %c0_i32_0 = arith.constant 0 : i32
    return %arg0, %c0_i32 : i32, i32
  }
  func.func @transform_2(%arg0: i32) -> (i32, i32) {
    %c0_i32 = arith.constant 0 : i32
    %c0_i32_0 = arith.constant 0 : i32
    return %arg0, %c0_i32 : i32, i32
  }
  func.func @transform_3(%arg0: i32) -> (i32, i32) {
    %c0_i32 = arith.constant 0 : i32
    %c0_i32_0 = arith.constant 0 : i32
    %c0_i32_1 = arith.constant 0 : i32
    return %c0_i32, %c0_i32_0 : i32, i32
  }
  func.func @transform_4(%arg0: i32) -> (i32, i32) {
    %c0_i32 = arith.constant 0 : i32
    %c0_i32_0 = arith.constant 0 : i32
    %c0_i32_1 = arith.constant 0 : i32
    return %c0_i32, %c0_i32_0 : i32, i32
  }
  func.func @transform_5(%arg0: i32) -> (i32, i32) {
    %c0_i32 = arith.constant 0 : i32
    %c0_i32_0 = arith.constant 0 : i32
    %c0_i32_1 = arith.constant 0 : i32
    return %c0_i32, %c0_i32_0 : i32, i32
  }
  func.func @transform_6(%arg0: i32) -> (i32, i32) {
    %c0_i32 = arith.constant 0 : i32
    %c0_i32_0 = arith.constant 0 : i32
    return %arg0, %c0_i32 : i32, i32
  }
  func.func @transform_7(%arg0: i32) -> (i32, i32) {
    %c0_i32 = arith.constant 0 : i32
    %c0_i32_0 = arith.constant 0 : i32
    return %arg0, %c0_i32 : i32, i32
  }
}

</mosaic_0001>

<bundles_post_ra>
// kernel: _lstm_cell_impl.1
= control target key start
LH: loop header
LB: loop body
LE: loop exit
PB: predicated region body
PF: predicated region fallthrough
CT: control target
= control target key end

     0   :  { %13 = vsyncpa [#allocation3], 0  ;;  %s936_s0 = inlined_call_operand.vmem [shape: f32[8,64], index: 0, kind: input, shape index: {}]   ;;  %s937_s1 = inlined_call_operand.hbm [shape: f32[8,128], index: 1, kind: input, shape index: {}, may-alias: {1,6}]   ;;  %s938_s2 = inlined_call_operand.hbm [shape: f32[8,128], index: 2, kind: input, shape index: {}, may-alias: {2,7}]   ;;  %s939_s3 = inlined_call_operand.hbm [shape: f32[64,512], index: 3, kind: input, shape index: {}]   ;;  %s940_s4 = inlined_call_operand.hbm [shape: f32[128,512], index: 4, kind: input, shape index: {}]   ;;  %s941_s5 = inlined_call_operand.vmem [shape: f32[1,512], index: 5, kind: input, shape index: {}]   ;;  %s942_s6 = inlined_call_operand.hbm [shape: f32[8,128], index: 6, kind: output, shape index: {0}, may-alias: {1,6}]   ;;  %s943_s7 = inlined_call_operand.hbm [shape: f32[8,128], index: 7, kind: output, shape index: {1}, may-alias: {2,7}]  }
   0x1   :  { %14 = vsyncpa [#allocation6], 0 }
   0x2   :  { %15 = vsyncpa [#allocation9], 0 }
   0x3   :  { %16 = vsyncpa [#allocation4], 0 }
   0x4   :  { %17 = vsyncpa [#allocation12], 0  ;;  %s805_s24 = smov [#allocation5]   ;;  %s806_s26 = smov [#allocation2]  }
   0x5   :  { %s36_s25 = sshll.u32 %s805_s24, 4  ;;  %s26_s27 = sshll.u32 %s806_s26, 4  ;;  %s37_s25 = int_to_ptr.vmem [resolvable:$true] %s36_s25  ;;  %s27_s27 = int_to_ptr.vmem [resolvable:$true] %s26_s27 }
   0x6   :  { %s663_s30 = scalar_lea.hbm %s938_s2, 128 }
   0x7   :  { %p664_p0 = scmp.ne.s32.totalorder %s938_s2, %s663_s30  ;;  %p667_p1 = scmp.lt.u32.totalorder %s663_s30, %s938_s2 }
   0x9   :  { %p669_p2 = pnand %p667_p1, %p664_p0 }
   0xb   :  { %672 = shalt.err (!%p669_p2)
}
   0xc   :  { %s673_s12 = scalar_lea.vmem %s37_s25, 128  ;;  %p678_p4 = scmp.lt.s32.totalorder %s37_s25, %s37_s25 }
   0xd   :  { %p674_p3 = scmp.ne.s32.totalorder %s37_s25, %s673_s12  ;;  %p679_p5 = scmp.lt.s32.totalorder %s673_s12, %s673_s12 }
   0xf   :  { %p680_p6 = por %p679_p5, %p678_p4 }
  0x11   :  { %p681_p7 = pnand %p680_p6, %p674_p3 }
  0x13   :  { %684 = shalt.err (!%p681_p7)
}
  0x14   :  { %39 = dma.hbm_to_vmem [thread:$0]  %s938_s2, 128, %s37_s25, [#allocation6]  }
  0x15   :  { %s685_s17 = scalar_lea.hbm %s937_s1, 128 }
  0x16   :  { %p686_p8 = scmp.ne.s32.totalorder %s937_s1, %s685_s17  ;;  %p689_p9 = scmp.lt.u32.totalorder %s685_s17, %s937_s1 }
  0x18   :  { %p691_p10 = pnand %p689_p9, %p686_p8 }
  0x1a   :  { %694 = shalt.err (!%p691_p10)
}
  0x1b   :  { %s695_s22 = scalar_lea.vmem %s27_s27, 128  ;;  %p700_p12 = scmp.lt.s32.totalorder %s27_s27, %s27_s27 }
  0x1c   :  { %p696_p11 = scmp.ne.s32.totalorder %s27_s27, %s695_s22  ;;  %p701_p13 = scmp.lt.s32.totalorder %s695_s22, %s695_s22 }
  0x1e   :  { %p702_p0 = por %p701_p13, %p700_p12 }
  0x20   :  { %p703_p1 = pnand %p702_p0, %p696_p11 }
  0x22   :  { %706 = shalt.err (!%p703_p1)
}
  0x23   :  { %29 = dma.hbm_to_vmem [thread:$0]  %s937_s1, 128, %s27_s27, [#allocation3]  }
  0x24   :  { %s807_s24 = smov [#allocation7]   ;;  %s707_s29 = scalar_lea.hbm %s939_s3, 4096 }
  0x25   :  { %s45_s25 = sshll.u32 %s807_s24, 4  ;;  %p708_p2 = scmp.ne.s32.totalorder %s939_s3, %s707_s29  ;;  %s46_s25 = int_to_ptr.vmem [resolvable:$true] %s45_s25 }
  0x26   :  { %p711_p3 = scmp.lt.u32.totalorder %s707_s29, %s939_s3 }
  0x28   :  { %p713_p4 = pnand %p711_p3, %p708_p2 }
  0x2a   :  { %716 = shalt.err (!%p713_p4)
}
  0x2b   :  { %s717_s11 = scalar_lea.vmem %s46_s25, 4096  ;;  %p722_p6 = scmp.lt.s32.totalorder %s46_s25, %s46_s25 }
  0x2c   :  { %p718_p5 = scmp.ne.s32.totalorder %s46_s25, %s717_s11  ;;  %p723_p7 = scmp.lt.s32.totalorder %s717_s11, %s717_s11 }
  0x2e   :  { %p724_p8 = por %p723_p7, %p722_p6 }
  0x30   :  { %p725_p9 = pnand %p724_p8, %p718_p5 }
  0x32   :  { %728 = shalt.err (!%p725_p9)
}
  0x33   :  { %s808_s1 = smov 512   ;;  %s809_s27 = smov 32  }
  0x34   :  { %51 = dma.hbm_to_vmem [thread:$0]  %s939_s3, 4096, %s46_s25, [#allocation6], %s808_s1, %s808_s1, %s809_s27  }
  0x35   :  { %s810_s14 = smov [#allocation8]   ;;  %s729_s18 = scalar_lea.hbm %s940_s4, 8192 }
  0x36   :  { %s57_s15 = sshll.u32 %s810_s14, 4  ;;  %p730_p10 = scmp.ne.s32.totalorder %s940_s4, %s729_s18  ;;  %s58_s15 = int_to_ptr.vmem [resolvable:$true] %s57_s15 }
  0x37   :  { %p733_p11 = scmp.lt.u32.totalorder %s729_s18, %s940_s4 }
  0x39   :  { %p735_p12 = pnand %p733_p11, %p730_p10 }
  0x3b   :  { %738 = shalt.err (!%p735_p12)
}
  0x3c   :  { %s739_s2 = scalar_lea.vmem %s58_s15, 8192  ;;  %p744_p0 = scmp.lt.s32.totalorder %s58_s15, %s58_s15 }
  0x3d   :  { %p740_p13 = scmp.ne.s32.totalorder %s58_s15, %s739_s2  ;;  %p745_p1 = scmp.lt.s32.totalorder %s739_s2, %s739_s2 }
  0x3f   :  { %p746_p2 = por %p745_p1, %p744_p0 }
  0x41   :  { %p747_p3 = pnand %p746_p2, %p740_p13 }
  0x43   :  { %750 = shalt.err (!%p747_p3)
}
  0x44   :  { %63 = dma.hbm_to_vmem [thread:$0]  %s940_s4, 8192, %s58_s15, [#allocation9], %s808_s1, %s808_s1, %s809_s27  }
  0x45   :  { %795 = dma.done.wait [#allocation3], 128  }
  0x46   :  { %796 = vsyncadd [#allocation3], 4294967168 }
  0x47   :  { %797 = dma.done.wait [#allocation6], 4224  }
  0x48   :  { %798 = vsyncadd [#allocation6], 4294963072 }
  0x49   :  { %799 = dma.done.wait [#allocation9], 8192  }
  0x4a   :  { %800 = vsyncadd [#allocation9], 4294959104  ;;  %v811_v0 = vmov 0.0   ;;  %v113_v1 = vld [vmem:[#allocation8 + $0x8] sm:$0xff]  ;;  %v115_v3 = vld [vmem:[#allocation8 + $0x18] sm:$0xff]  ;;  %vm318_vm0 = vcmask 523264  }
  0x4b   :  { %240 = vmatprep.mubr.f32.mxu0 %v811_v0  ;;  %311 = vmatprep.mubr.f32.mxu1 %v811_v0  ;;  %v117_v2 = vld [vmem:[#allocation8 + $0x28] sm:$0xff]  ;;  %v119_v5 = vld [vmem:[#allocation8 + $0x38] sm:$0xff]  ;;  %v112_v6 = vld [vmem:[#allocation8] sm:$0xff] }
  0x4c   :  { %v544_v4 = vpack.c.bf16 %v117_v2, %v113_v1  ;;  %v116_v7 = vld [vmem:[#allocation8 + $0x20] sm:$0xff]  ;;  %v576_v8 = vpack.c.bf16 %v119_v5, %v115_v3  ;;  %v114_v10 = vld [vmem:[#allocation8 + $0x10] sm:$0xff]  ;;  %v121_v12 = vld [vmem:[#allocation8 + $0x48] sm:$0xff] }
  0x4d   :  { %v546_v9 = vpack.c.bf16 %v116_v7, %v112_v6  ;;  %v118_v11 = vld [vmem:[#allocation8 + $0x30] sm:$0xff]  ;;  %v125_v14 = vld [vmem:[#allocation8 + $0x68] sm:$0xff]  ;;  %v123_v15 = vld [vmem:[#allocation8 + $0x58] sm:$0xff] }
  0x4e   :  { %545 = vmatprep.subr.bf16.mxu0 %v544_v4  ;;  %v578_v13 = vpack.c.bf16 %v118_v11, %v114_v10  ;;  %v127_v16 = vld [vmem:[#allocation8 + $0x78] sm:$0xff]  ;;  %577 = vmatprep.subr.bf16.mxu1 %v576_v8  ;;  %v548_v17 = vpack.c.bf16 %v125_v14, %v121_v12  ;;  %v120_v19 = vld [vmem:[#allocation8 + $0x40] sm:$0xff]  ;;  %v122_v21 = vld [vmem:[#allocation8 + $0x50] sm:$0xff] }
  0x4f   :  { %547 = vmatpush1.bf16.msra.mxu0 %v546_v9  ;;  %v580_v18 = vpack.c.bf16 %v127_v16, %v123_v15  ;;  %v124_v20 = vld [vmem:[#allocation8 + $0x60] sm:$0xff]  ;;  %v126_v23 = vld [vmem:[#allocation8 + $0x70] sm:$0xff]  ;;  %v129_v24 = vld [vmem:[#allocation8 + $0x88] sm:$0xff] }
  0x50   :  { %579 = vmatpush1.bf16.msra.mxu1 %v578_v13  ;;  %v550_v22 = vpack.c.bf16 %v124_v20, %v120_v19  ;;  %v133_v25 = vld [vmem:[#allocation8 + $0xa8] sm:$0xff]  ;;  %549 = vmatprep.subr.bf16.mxu0 %v548_v17  ;;  %v582_v26 = vpack.c.bf16 %v126_v23, %v122_v21  ;;  %v131_v28 = vld [vmem:[#allocation8 + $0x98] sm:$0xff]  ;;  %v128_v30 = vld [vmem:[#allocation8 + $0x80] sm:$0xff] }
  0x51   :  { %581 = vmatprep.subr.bf16.mxu1 %v580_v18  ;;  %v552_v27 = vpack.c.bf16 %v133_v25, %v129_v24  ;;  %v135_v29 = vld [vmem:[#allocation8 + $0xb8] sm:$0xff]  ;;  %v132_v32 = vld [vmem:[#allocation8 + $0xa0] sm:$0xff]  ;;  %v130_v33 = vld [vmem:[#allocation8 + $0x90] sm:$0xff] }
  0x52   :  { %v584_v31 = vpack.c.bf16 %v135_v29, %v131_v28  ;;  %v134_v34 = vld [vmem:[#allocation8 + $0xb0] sm:$0xff]  ;;  %v554_v35 = vpack.c.bf16 %v132_v32, %v128_v30  ;;  %v137_v36 = vld [vmem:[#allocation8 + $0xc8] sm:$0xff]  ;;  %v139_v38 = vld [vmem:[#allocation8 + $0xd8] sm:$0xff] }
  0x53   :  { %551 = vmatpush1.bf16.msra.mxu0 %v550_v22  ;;  %v141_v37 = vld [vmem:[#allocation8 + $0xe8] sm:$0xff]  ;;  %v586_v39 = vpack.c.bf16 %v134_v34, %v130_v33  ;;  %v143_v41 = vld [vmem:[#allocation8 + $0xf8] sm:$0xff]  ;;  %v136_v42 = vld [vmem:[#allocation8 + $0xc0] sm:$0xff] }
  0x54   :  { %583 = vmatpush1.bf16.msra.mxu1 %v582_v26  ;;  %553 = vmatprep.subr.bf16.mxu0 %v552_v27  ;;  %v556_v40 = vpack.c.bf16 %v141_v37, %v137_v36  ;;  %v140_v43 = vld [vmem:[#allocation8 + $0xe0] sm:$0xff]  ;;  %v588_v44 = vpack.c.bf16 %v143_v41, %v139_v38  ;;  %v138_v45 = vld [vmem:[#allocation8 + $0xd0] sm:$0xff]  ;;  %v145_v47 = vld [vmem:[#allocation8 + $0x108] sm:$0xff] }
  0x55   :  { %585 = vmatprep.subr.bf16.mxu1 %v584_v31  ;;  %v142_v46 = vld [vmem:[#allocation8 + $0xf0] sm:$0xff]  ;;  %v149_v48 = vld [vmem:[#allocation8 + $0x128] sm:$0xff]  ;;  %v147_v49 = vld [vmem:[#allocation8 + $0x118] sm:$0xff]  ;;  %v558_v51 = vpack.c.bf16 %v140_v43, %v136_v42 }
  0x56   :  { %v151_v50 = vld [vmem:[#allocation8 + $0x138] sm:$0xff]  ;;  %v590_v52 = vpack.c.bf16 %v142_v46, %v138_v45  ;;  %v560_v53 = vpack.c.bf16 %v149_v48, %v145_v47  ;;  %v144_v54 = vld [vmem:[#allocation8 + $0x100] sm:$0xff]  ;;  %v146_v56 = vld [vmem:[#allocation8 + $0x110] sm:$0xff] }
  0x57   :  { %555 = vmatpush1.bf16.msra.mxu0 %v554_v35  ;;  %v148_v55 = vld [vmem:[#allocation8 + $0x120] sm:$0xff]  ;;  %v592_v57 = vpack.c.bf16 %v151_v50, %v147_v49  ;;  %v150_v58 = vld [vmem:[#allocation8 + $0x130] sm:$0xff]  ;;  %v153_v59 = vld [vmem:[#allocation8 + $0x148] sm:$0xff] }
  0x58   :  { %587 = vmatpush1.bf16.msra.mxu1 %v586_v39  ;;  %557 = vmatprep.subr.bf16.mxu0 %v556_v40  ;;  %v157_v60 = vld [vmem:[#allocation8 + $0x168] sm:$0xff]  ;;  %v155_v61 = vld [vmem:[#allocation8 + $0x158] sm:$0xff]  ;;  %v562_v63 = vpack.c.bf16 %v148_v55, %v144_v54  ;;  %v594_v1 = vpack.c.bf16 %v150_v58, %v146_v56  ;;  %v152_v3 = vld [vmem:[#allocation8 + $0x140] sm:$0xff] }
  0x59   :  { %589 = vmatprep.subr.bf16.mxu1 %v588_v44  ;;  %v159_v62 = vld [vmem:[#allocation8 + $0x178] sm:$0xff]  ;;  %v564_v2 = vpack.c.bf16 %v157_v60, %v153_v59  ;;  %v156_v4 = vld [vmem:[#allocation8 + $0x160] sm:$0xff]  ;;  %v154_v5 = vld [vmem:[#allocation8 + $0x150] sm:$0xff] }
  0x5a   :  { %v596_v6 = vpack.c.bf16 %v159_v62, %v155_v61  ;;  %v158_v7 = vld [vmem:[#allocation8 + $0x170] sm:$0xff]  ;;  %v161_v8 = vld [vmem:[#allocation8 + $0x188] sm:$0xff]  ;;  %v163_v10 = vld [vmem:[#allocation8 + $0x198] sm:$0xff]  ;;  %v566_v12 = vpack.c.bf16 %v156_v4, %v152_v3 }
  0x5b   :  { %559 = vmatpush1.bf16.msra.mxu0 %v558_v51  ;;  %v165_v9 = vld [vmem:[#allocation8 + $0x1a8] sm:$0xff]  ;;  %v167_v11 = vld [vmem:[#allocation8 + $0x1b8] sm:$0xff]  ;;  %v598_v13 = vpack.c.bf16 %v158_v7, %v154_v5  ;;  %v160_v15 = vld [vmem:[#allocation8 + $0x180] sm:$0xff] }
  0x5c   :  { %591 = vmatpush1.bf16.msra.mxu1 %v590_v52  ;;  %561 = vmatprep.subr.bf16.mxu0 %v560_v53  ;;  %v568_v14 = vpack.c.bf16 %v165_v9, %v161_v8  ;;  %v164_v16 = vld [vmem:[#allocation8 + $0x1a0] sm:$0xff]  ;;  %v162_v17 = vld [vmem:[#allocation8 + $0x190] sm:$0xff]  ;;  %v600_v18 = vpack.c.bf16 %v167_v11, %v163_v10  ;;  %v169_v20 = vld [vmem:[#allocation8 + $0x1c8] sm:$0xff] }
  0x5d   :  { %593 = vmatprep.subr.bf16.mxu1 %v592_v57  ;;  %v166_v19 = vld [vmem:[#allocation8 + $0x1b0] sm:$0xff]  ;;  %v173_v21 = vld [vmem:[#allocation8 + $0x1e8] sm:$0xff]  ;;  %v171_v22 = vld [vmem:[#allocation8 + $0x1d8] sm:$0xff]  ;;  %v570_v24 = vpack.c.bf16 %v164_v16, %v160_v15 }
  0x5e   :  { %v175_v23 = vld [vmem:[#allocation8 + $0x1f8] sm:$0xff]  ;;  %v602_v25 = vpack.c.bf16 %v166_v19, %v162_v17  ;;  %v572_v26 = vpack.c.bf16 %v173_v21, %v169_v20  ;;  %v168_v27 = vld [vmem:[#allocation8 + $0x1c0] sm:$0xff]  ;;  %v170_v29 = vld [vmem:[#allocation8 + $0x1d0] sm:$0xff]  ;;  %v466_v20 = vlaneseq }
  0x5f   :  { %563 = vmatpush1.bf16.msra.mxu0 %v562_v63  ;;  %v172_v28 = vld [vmem:[#allocation8 + $0x1e0] sm:$0xff]  ;;  %v604_v30 = vpack.c.bf16 %v175_v23, %v171_v22  ;;  %v174_v31 = vld [vmem:[#allocation8 + $0x1f0] sm:$0xff]  ;;  %v80_v32 = vld [vmem:[#allocation7 + $0x8] sm:$0xff] }
  0x60   :  { %595 = vmatpush1.bf16.msra.mxu1 %v594_v1  ;;  %565 = vmatprep.subr.bf16.mxu0 %v564_v2  ;;  %v84_v33 = vld [vmem:[#allocation7 + $0x28] sm:$0xff]  ;;  %v82_v34 = vld [vmem:[#allocation7 + $0x18] sm:$0xff]  ;;  %v574_v36 = vpack.c.bf16 %v172_v28, %v168_v27  ;;  %v606_v37 = vpack.c.bf16 %v174_v31, %v170_v29  ;;  %v79_v39 = vld [vmem:[#allocation7] sm:$0xff]  ;;  %v467_v21 = vshrl.u32 %v466_v20, 7 }
  0x61   :  { %597 = vmatprep.subr.bf16.mxu1 %v596_v6  ;;  %v86_v35 = vld [vmem:[#allocation7 + $0x38] sm:$0xff]  ;;  %v608_v38 = vpack.c.bf16 %v84_v33, %v80_v32  ;;  %v83_v40 = vld [vmem:[#allocation7 + $0x20] sm:$0xff]  ;;  %v81_v41 = vld [vmem:[#allocation7 + $0x10] sm:$0xff] }
  0x62   :  { %v624_v42 = vpack.c.bf16 %v86_v35, %v82_v34  ;;  %v85_v43 = vld [vmem:[#allocation7 + $0x30] sm:$0xff]  ;;  %v88_v44 = vld [vmem:[#allocation7 + $0x48] sm:$0xff]  ;;  %v90_v46 = vld [vmem:[#allocation7 + $0x58] sm:$0xff]  ;;  %v610_v49 = vpack.c.bf16 %v83_v40, %v79_v39  ;;  %v468_v22 = vsub.s32 0, %v467_v21  ;;  %v480_v33 = vsub.s32 3, %v467_v21 }
  0x63   :  { %567 = vmatpush1.bf16.msra.mxu0 %v566_v12  ;;  %v92_v45 = vld [vmem:[#allocation7 + $0x68] sm:$0xff]  ;;  %v94_v47 = vld [vmem:[#allocation7 + $0x78] sm:$0xff]  ;;  %v111_v48 = vld [vmem:[#allocation2] sm:$0xff]  ;;  %v626_v50 = vpack.c.bf16 %v85_v43, %v81_v41 }
  0x64   :  { %599 = vmatpush1.bf16.msra.mxu1 %v598_v13  ;;  %569 = vmatprep.subr.bf16.mxu0 %v568_v14  ;;  %v612_v51 = vpack.c.bf16 %v92_v45, %v88_v44  ;;  %v87_v52 = vld [vmem:[#allocation7 + $0x40] sm:$0xff]  ;;  %v89_v54 = vld [vmem:[#allocation7 + $0x50] sm:$0xff]  ;;  %v628_v55 = vpack.c.bf16 %v94_v47, %v90_v46  ;;  %v96_v57 = vld [vmem:[#allocation7 + $0x88] sm:$0xff] }
  0x65   :  { %601 = vmatprep.subr.bf16.mxu1 %v600_v18  ;;  %v91_v53 = vld [vmem:[#allocation7 + $0x60] sm:$0xff]  ;;  %v93_v56 = vld [vmem:[#allocation7 + $0x70] sm:$0xff]  ;;  %v100_v58 = vld [vmem:[#allocation7 + $0xa8] sm:$0xff] }
  0x66   :  { %v98_v59 = vld [vmem:[#allocation7 + $0x98] sm:$0xff]  ;;  %v614_v61 = vpack.c.bf16 %v91_v53, %v87_v52  ;;  %v630_v62 = vpack.c.bf16 %v93_v56, %v89_v54  ;;  %v616_v63 = vpack.c.bf16 %v100_v58, %v96_v57  ;;  %v95_v1 = vld [vmem:[#allocation7 + $0x80] sm:$0xff]  ;;  %v97_v3 = vld [vmem:[#allocation7 + $0x90] sm:$0xff] }
  0x67   :  { %571 = vmatpush1.bf16.msra.mxu0 %v570_v24  ;;  %v102_v60 = vld [vmem:[#allocation7 + $0xb8] sm:$0xff]  ;;  %v99_v2 = vld [vmem:[#allocation7 + $0xa0] sm:$0xff]  ;;  %v101_v5 = vld [vmem:[#allocation7 + $0xb0] sm:$0xff]  ;;  %v472_v24 = vsub.s32 1, %v467_v21 }
  0x68   :  { %603 = vmatpush1.bf16.msra.mxu1 %v602_v25  ;;  %573 = vmatprep.subr.bf16.mxu0 %v572_v26  ;;  %v632_v4 = vpack.c.bf16 %v102_v60, %v98_v59  ;;  %v104_v6 = vld [vmem:[#allocation7 + $0xc8] sm:$0xff]  ;;  %v106_v8 = vld [vmem:[#allocation7 + $0xd8] sm:$0xff]  ;;  %v618_v10 = vpack.c.bf16 %v99_v2, %v95_v1  ;;  %v634_v11 = vpack.c.bf16 %v101_v5, %v97_v3  ;;  %v103_v13 = vld [vmem:[#allocation7 + $0xc0] sm:$0xff]  ;;  %v476_v26 = vsub.s32 2, %v467_v21 }
  0x69   :  { %605 = vmatprep.subr.bf16.mxu1 %v604_v30  ;;  %v108_v7 = vld [vmem:[#allocation7 + $0xe8] sm:$0xff]  ;;  %v110_v9 = vld [vmem:[#allocation7 + $0xf8] sm:$0xff]  ;;  %v107_v14 = vld [vmem:[#allocation7 + $0xe0] sm:$0xff] }
  0x6a   :  { %v620_v12 = vpack.c.bf16 %v108_v7, %v104_v6  ;;  %v636_v15 = vpack.c.bf16 %v110_v9, %v106_v8  ;;  %v105_v16 = vld [vmem:[#allocation7 + $0xd0] sm:$0xff]  ;;  %v622_v18 = vpack.c.bf16 %v107_v14, %v103_v13  ;;  %v490_v47 = vld [vmem:[#allocation5] sm:$0xff] }
  0x6b   :  { %575 = vmatpush1.bf16.msra.mxu0 %v574_v36  ;;  %v109_v17 = vld [vmem:[#allocation7 + $0xf0] sm:$0xff] }
  0x6c   :  { %607 = vmatpush1.bf16.msra.mxu1 %v606_v37  ;;  %609 = vmatprep.subr.bf16.mxu0 %v608_v38  ;;  %v638_v19 = vpack.c.bf16 %v109_v17, %v105_v16  ;;  %v464_v23 = vld [vmem:[%s941_s5] sm:$0xf] }
  0x6d   :  { %625 = vmatprep.subr.bf16.mxu1 %v624_v42  ;;  %v469_v25 = vrot.slane %v464_v23, %v468_v22  ;;  %v473_v27 = vrot.slane %v464_v23, %v472_v24  ;;  %v477_v31 = vrot.slane %v464_v23, %v476_v26  ;;  %v481_v39 = vrot.slane %v464_v23, %v480_v33 }
  0x6e   :  { %241 = vmatmul.mubr.f32.vlgmr.msra.gmra.mrb[0].mxu0 %v111_v48 }
  0x6f   :  { %312 = vmatmul.mubr.f32.vlgmr.msra.gmra.mrb[0].mxu1 %v111_v48  ;;  %611 = vmatpush1.bf16.msra.mxu0 %v610_v49 }
  0x70   :  { %627 = vmatpush1.bf16.msra.mxu1 %v626_v50  ;;  %613 = vmatprep.subr.bf16.mxu0 %v612_v51 }
  0x71   :  { %629 = vmatprep.subr.bf16.mxu1 %v628_v55  ;;  %386 = vmatprep.mubr.f32.mxu0 %v811_v0 }
  0x72   :  { %457 = vmatprep.mubr.f32.mxu1 %v811_v0  ;;  %v78_v0 = vld [vmem:[%s936_s0] sm:$0xff]  ;;  %s812_s0 = smov [#allocation11]  }
  0x73   :  { %615 = vmatpush1.bf16.msra.mxu0 %v614_v61  ;;  %s527_s5 = sshll.u32 %s812_s0, 4  ;;  %s528_s5 = int_to_ptr.vmem [resolvable:$true] %s527_s5 }
  0x74   :  { %631 = vmatpush1.bf16.msra.mxu1 %v630_v62  ;;  %617 = vmatprep.subr.bf16.mxu0 %v616_v63  ;;  %s751_s28 = scalar_lea.vmem %s528_s5, 128  ;;  %p756_p5 = scmp.lt.s32.totalorder %s528_s5, %s528_s5 }
  0x75   :  { %633 = vmatprep.subr.bf16.mxu1 %v632_v4  ;;  %p752_p4 = scmp.ne.s32.totalorder %s528_s5, %s751_s28  ;;  %p757_p6 = scmp.lt.s32.totalorder %s751_s28, %s751_s28 }
  0x77   :  { %619 = vmatpush1.bf16.msra.mxu0 %v618_v10  ;;  %p758_p7 = por %p757_p6, %p756_p5 }
  0x78   :  { %635 = vmatpush1.bf16.msra.mxu1 %v634_v11  ;;  %621 = vmatprep.subr.bf16.mxu0 %v620_v12 }
  0x79   :  { %637 = vmatprep.subr.bf16.mxu1 %v636_v15  ;;  %p759_p8 = pnand %p758_p7, %p752_p4 }
  0x7b   :  { %623 = vmatpush1.bf16.msra.mxu0 %v622_v18 }
  0x7c   :  { %639 = vmatpush1.bf16.msra.mxu1 %v638_v19 }
  0x7e   :  { %542 = vmatmul.mubr.msk.f32.vlgmr.msra.gmra.mrb[0].mxu0 %vm318_vm0, %v78_v0 }
  0x7f   :  { %543 = vmatmul.mubr.msk.f32.vlgmr.msra.gmra.mrb[0].mxu1 %vm318_vm0, %v78_v0 }
 0x151   :  { %v388_v28 = vpop.f32.mrb[0].mxu0 }
 0x152   :  { %v486_v29 = vadd.f32 %v469_v25, %v388_v28  ;;  %v459_v30 = vpop.f32.mrb[0].mxu1  ;;  %v390_v32 = vpop.f32.mrb[1].mxu0 }
 0x153   :  { %v487_v34 = vadd.f32 %v473_v27, %v390_v32  ;;  %v461_v35 = vpop.f32.mrb[1].mxu1  ;;  %v488_v38 = vadd.f32 %v477_v31, %v459_v30 }
 0x154   :  { %v491_v36 = vmul.f32 0.5, %v486_v29  ;;  %v489_v40 = vadd.f32 %v481_v39, %v461_v35 }
 0x155   :  { %v495_v37 = vmul.f32 0.5, %v487_v34 }
 0x156   :  { %653 = vtanh.f32 %v491_v36  ;;  %v500_v41 = vmul.f32 0.5, %v489_v40 }
 0x157   :  { %655 = vtanh.f32 %v495_v37 }
 0x158   :  { %657 = vtanh.f32 %v488_v38 }
 0x159   :  { %659 = vtanh.f32 %v500_v41 }
 0x160   :  { %v654_v42 = vpop.eup %653 }
 0x161   :  { %v656_v43 = vpop.eup %655  ;;  %v493_v44 = vadd.f32 1.0, %v654_v42 }
 0x162   :  { %v497_v45 = vadd.f32 1.0, %v656_v43  ;;  %v658_v48 = vpop.eup %657 }
 0x163   :  { %v494_v46 = vmul.f32 0.5, %v493_v44 }
 0x164   :  { %v498_v49 = vmul.f32 0.5, %v497_v45 }
 0x165   :  { %v505_v50 = vmul.f32 %v658_v48, %v494_v46 }
 0x166   :  { %v504_v51 = vmul.f32 %v498_v49, %v490_v47 }
 0x168   :  { %v506_v52 = vadd.f32 %v505_v50, %v504_v51 }
 0x16a   :  { %661 = vtanh.f32 %v506_v52  ;;  %510 = vst [vmem:[#allocation11] sm:$0xff] %v506_v52 }
 0x16b   :  { %762 = shalt.err (!%p759_p8)
}
 0x16c   :  { %s763_s8 = scalar_lea.hbm %s943_s7, 128 }
 0x16d   :  { %p764_p9 = scmp.ne.s32.totalorder %s943_s7, %s763_s8  ;;  %p767_p10 = scmp.lt.u32.totalorder %s763_s8, %s943_s7 }
 0x16f   :  { %p769_p11 = pnand %p767_p10, %p764_p9 }
 0x171   :  { %772 = shalt.err (!%p769_p11)
}
 0x172   :  { %530 = dma.vmem_to_hbm [thread:$0]  %s528_s5, 128, %s943_s7, [#allocation12]   ;;  %v660_v53 = vpop.eup %659 }
 0x173   :  { %v502_v54 = vadd.f32 1.0, %v660_v53  ;;  %s813_s13 = smov [#allocation10]  }
 0x174   :  { %s517_s14 = sshll.u32 %s813_s13, 4  ;;  %v662_v56 = vpop.eup %661  ;;  %s518_s14 = int_to_ptr.vmem [resolvable:$true] %s517_s14 }
 0x175   :  { %v503_v55 = vmul.f32 0.5, %v502_v54  ;;  %s773_s15 = scalar_lea.vmem %s518_s14, 128  ;;  %p778_p13 = scmp.lt.s32.totalorder %s518_s14, %s518_s14 }
 0x176   :  { %p774_p12 = scmp.ne.s32.totalorder %s518_s14, %s773_s15  ;;  %p779_p0 = scmp.lt.s32.totalorder %s773_s15, %s773_s15 }
 0x177   :  { %v508_v57 = vmul.f32 %v662_v56, %v503_v55 }
 0x178   :  { %p780_p1 = por %p779_p0, %p778_p13 }
 0x179   :  { %509 = vst [vmem:[#allocation10] sm:$0xff] %v508_v57 }
 0x17a   :  { %p781_p2 = pnand %p780_p1, %p774_p12 }
 0x17c   :  { %784 = shalt.err (!%p781_p2)
}
 0x17d   :  { %s785_s7 = scalar_lea.hbm %s942_s6, 128 }
 0x17e   :  { %p786_p3 = scmp.ne.s32.totalorder %s942_s6, %s785_s7  ;;  %p789_p4 = scmp.lt.u32.totalorder %s785_s7, %s942_s6 }
 0x180   :  { %p791_p5 = pnand %p789_p4, %p786_p3 }
 0x182   :  { %794 = shalt.err (!%p791_p5)
}
 0x183   :  { %520 = dma.vmem_to_hbm [thread:$0]  %s518_s14, 128, %s942_s6, [#allocation4]  }
 0x184   :  { %801 = dma.done.wait [#allocation4], 128  }
 0x185   :  { %802 = vsyncadd [#allocation4], 4294967168 }
 0x186   :  { %803 = dma.done.wait [#allocation12], 128  }
 0x187   :  { %804 = vsyncadd [#allocation12], 4294967168 }
 0x188   :  { %537 = vsyncpa [#allocation3], 1 }
 0x189   :  { %538 = vsyncpa [#allocation6], 1 }
 0x18a   :  { %539 = vsyncpa [#allocation9], 1 }
 0x18b   :  { %540 = vsyncpa [#allocation4], 1 }
 0x18c   :  { %541 = vsyncpa [#allocation12], 1 }

</bundles_post_ra>
